<compile_context>
chip_gen: v7x
topology: tpu7x:2x2x1
jax: 0.10.0
libtpu: 0.0.40
codegen_flags: <defaults>
</compile_context>

<pallas_src>
import jax
import jax.numpy as jnp
from jax.experimental import pallas as pl
from jax.experimental.pallas import tpu as pltpu

LANE = 128  # TPU vreg lane width


def _linear_kernel(w_ref, b_ref, x_ref, o_ref):
    # w_ref: SMEM (out_f * in_f,) float32, row-major [j, k]  (scalar splats)
    # b_ref: SMEM (out_f,)        float32                     (scalar splats)
    # x_ref: VMEM (in_f, TB)      transposed input tile (lane-dense rows)
    # o_ref: VMEM (out_f, TB)     transposed output tile (lane-dense rows)
    x = x_ref[...]
    in_f = x_ref.shape[0]
    out_f = o_ref.shape[0]
    tb = x.shape[1]

    rows = []
    # Static unroll over out_f (2) and in_f (2): pure VPU scalar-splat FMAs.
    for j in range(out_f):
        acc = jnp.full((1, tb), b_ref[j], dtype=jnp.float32)
        for k in range(in_f):
            acc = acc + w_ref[j * in_f + k] * x[k:k + 1, :]
        rows.append(acc)
    o_ref[...] = jnp.concatenate(rows, axis=0).astype(o_ref.dtype)


def one_layer_mlp(x, weight, bias, *, max_block_b=8192, xla_threshold=4096,
                  force_pallas=False):
    """Forward of OneLayerMLP: y = x @ weight.T + bias.

    x:      [B, in_f]       float32
    weight: [out_f, in_f]   float32 (PyTorch convention)
    bias:   [out_f]         float32
    returns [B, out_f]      float32
    """
    B, in_f = x.shape
    out_f, in_f_w = weight.shape
    assert in_f == in_f_w

    # Fast path: for small batches the pallas_call launch/step overhead
    # dominates — plain XLA is strictly better there.
    if (not force_pallas) and B < xla_threshold:
        return x @ weight.T + bias

    # Batch tile: multiple of the 128-lane width, large enough to amortize
    # per-step overhead, capped so big batches give >= 2 grid steps (v7x has
    # 2 TensorCores and "parallel" shards grid steps across them).
    tb = min(max_block_b, pl.cdiv(B, LANE) * LANE)
    if B > 2 * LANE:
        tb = min(tb, pl.cdiv(pl.cdiv(B, 2), LANE) * LANE)
    b_pad = pl.cdiv(B, tb) * tb

    # Transposed input, zero-padded to the tiled batch in a single fused copy
    # (the transpose is needed anyway for lane-dense DMA; no separate jnp.pad
    # pass over the full array).
    x_t = jnp.zeros((in_f, b_pad), x.dtype).at[:, :B].set(x.T)
    w_flat = weight.reshape(-1).astype(jnp.float32)
    b_vec = bias.astype(jnp.float32)

    grid = (b_pad // tb,)

    y_t = pl.pallas_call(
        _linear_kernel,
        out_shape=jax.ShapeDtypeStruct((out_f, b_pad), x.dtype),
        grid=grid,
        in_specs=[
            # 6 scalars total: live in SMEM, read as sreg splats in-kernel.
            pl.BlockSpec(memory_space=pltpu.MemorySpace.SMEM),
            pl.BlockSpec(memory_space=pltpu.MemorySpace.SMEM),
            # Streamed transposed-input tiles: two contiguous TB*4-byte rows.
            pl.BlockSpec((in_f, tb), lambda i: (0, i)),
        ],
        # Transposed, lane-dense output tile: only real bytes go to HBM.
        out_specs=pl.BlockSpec((out_f, tb), lambda i: (0, i)),
        compiler_params=pltpu.CompilerParams(
            dimension_semantics=("parallel",),
        ),
    )(w_flat, b_vec, x_t)

    # Back to PyTorch layout [B, out_f]; padded batch columns are dropped.
    return y_t[:, :B].T


if __name__ == "__main__":
    key = jax.random.PRNGKey(0)
    k_x, k_w, k_b, k_x2, k_x3 = jax.random.split(key, 5)

    # Linear(2, 2): weight [2, 2], bias [2]; PyTorch-style uniform init range.
    bound = 1.0 / jnp.sqrt(2.0)
    weight = jax.random.uniform(k_w, (2, 2), jnp.float32, -bound, bound)
    bias = jax.random.uniform(k_b, (2,), jnp.float32, -bound, bound)

    # Small batch matching the module's forward (force the Pallas path).
    x = jax.random.normal(k_x, (8, 2), jnp.float32)
    y = one_layer_mlp(x, weight, bias, force_pallas=True)
    jax.block_until_ready(y)
    y_ref = x @ weight.T + bias
    assert y.shape == (8, 2)
    assert jnp.allclose(y, y_ref, atol=1e-5, rtol=1e-5)

    # Ragged batch: exercises the padded last tile.
    x2 = jax.random.normal(k_x2, (70, 2), jnp.float32)
    y2 = one_layer_mlp(x2, weight, bias, force_pallas=True)
    jax.block_until_ready(y2)
    y2_ref = x2 @ weight.T + bias
    assert y2.shape == (70, 2)
    assert jnp.allclose(y2, y2_ref, atol=1e-5, rtol=1e-5)

    # Batch large enough to produce a >= 2-step grid (both-TC path on v7x).
    x3 = jax.random.normal(k_x3, (300, 2), jnp.float32)
    y3 = one_layer_mlp(x3, weight, bias, force_pallas=True)
    jax.block_until_ready(y3)
    y3_ref = x3 @ weight.T + bias
    assert y3.shape == (300, 2)
    assert jnp.allclose(y3, y3_ref, atol=1e-5, rtol=1e-5)

    # Default dispatch: small batches take the plain-XLA fast path.
    y_fast = one_layer_mlp(x, weight, bias)
    jax.block_until_ready(y_fast)
    assert jnp.allclose(y_fast, y_ref, atol=1e-5, rtol=1e-5)

    print("KERNEL_OK")
</pallas_src>

<mosaic_0001>
module attributes {stable_mosaic.version = 11 : i64} {
  func.func @_linear_kernel(%arg0: i32, %arg1: memref<4xf32, #tpu.memory_space<smem>>, %arg2: memref<2xf32, #tpu.memory_space<smem>>, %arg3: memref<2x128xf32, #tpu.memory_space<vmem>>, %arg4: memref<2x128xf32, #tpu.memory_space<vmem>>) attributes {dimension_semantics = [#tpu.dimension_semantics<parallel>], iteration_bounds = array<i64: 1>, scalar_prefetch = 0 : i64, scratch_operands = 0 : i64, tpu.core_type = #tpu.core_type<tc>, window_params = [{transform_indices = @transform_0, window_bounds = array<i64: 4>}, {transform_indices = @transform_1, window_bounds = array<i64: 2>}, {transform_indices = @transform_2, window_bounds = array<i64: 2, 128>}, {transform_indices = @transform_3, window_bounds = array<i64: 2, 128>}]} {
    %c0 = arith.constant 0 : index
    %c0_0 = arith.constant 0 : index
    %0 = vector.load %arg3[%c0, %c0_0] : memref<2x128xf32, #tpu.memory_space<vmem>>, vector<2x128xf32>
    %c0_1 = arith.constant 0 : index
    %1 = memref.load %arg2[%c0_1] : memref<2xf32, #tpu.memory_space<smem>>
    %2 = vector.broadcast %1 : f32 to vector<1x128xf32>
    %c0_2 = arith.constant 0 : index
    %3 = memref.load %arg1[%c0_2] : memref<4xf32, #tpu.memory_space<smem>>
    %4 = vector.extract_strided_slice %0 {offsets = [0, 0], sizes = [1, 128], strides = [1, 1]} : vector<2x128xf32> to vector<1x128xf32>
    %5 = vector.broadcast %3 : f32 to vector<1x128xf32>
    %6 = arith.mulf %5, %4 : vector<1x128xf32>
    %7 = arith.addf %2, %6 : vector<1x128xf32>
    %c1 = arith.constant 1 : index
    %8 = memref.load %arg1[%c1] : memref<4xf32, #tpu.memory_space<smem>>
    %9 = vector.extract_strided_slice %0 {offsets = [1, 0], sizes = [1, 128], strides = [1, 1]} : vector<2x128xf32> to vector<1x128xf32>
    %10 = vector.broadcast %8 : f32 to vector<1x128xf32>
    %11 = arith.mulf %10, %9 : vector<1x128xf32>
    %12 = arith.addf %7, %11 : vector<1x128xf32>
    %c1_3 = arith.constant 1 : index
    %13 = memref.load %arg2[%c1_3] : memref<2xf32, #tpu.memory_space<smem>>
    %14 = vector.broadcast %13 : f32 to vector<1x128xf32>
    %c2 = arith.constant 2 : index
    %15 = memref.load %arg1[%c2] : memref<4xf32, #tpu.memory_space<smem>>
    %16 = vector.extract_strided_slice %0 {offsets = [0, 0], sizes = [1, 128], strides = [1, 1]} : vector<2x128xf32> to vector<1x128xf32>
    %17 = vector.broadcast %15 : f32 to vector<1x128xf32>
    %18 = arith.mulf %17, %16 : vector<1x128xf32>
    %19 = arith.addf %14, %18 : vector<1x128xf32>
    %c3 = arith.constant 3 : index
    %20 = memref.load %arg1[%c3] : memref<4xf32, #tpu.memory_space<smem>>
    %21 = vector.extract_strided_slice %0 {offsets = [1, 0], sizes = [1, 128], strides = [1, 1]} : vector<2x128xf32> to vector<1x128xf32>
    %22 = vector.broadcast %20 : f32 to vector<1x128xf32>
    %23 = arith.mulf %22, %21 : vector<1x128xf32>
    %24 = arith.addf %19, %23 : vector<1x128xf32>
    %25 = tpu.concatenate %12, %24 in 0 : vector<1x128xf32>, vector<1x128xf32> -> vector<2x128xf32>
    %c0_4 = arith.constant 0 : index
    %c0_5 = arith.constant 0 : index
    %26 = vector.load %arg4[%c0_4, %c0_5] : memref<2x128xf32, #tpu.memory_space<vmem>>, vector<2x128xf32>
    tpu.vector_store %arg4[%c0_4, %c0_5], %25 {strides = array<i32>} : memref<2x128xf32, #tpu.memory_space<vmem>>, vector<2x128xf32>,
    return
  }
  func.func @transform_0(%arg0: i32) -> i32 {
    %c0_i32 = arith.constant 0 : i32
    %c0_i32_0 = arith.constant 0 : i32
    return %c0_i32 : i32
  }
  func.func @transform_1(%arg0: i32) -> i32 {
    %c0_i32 = arith.constant 0 : i32
    %c0_i32_0 = arith.constant 0 : i32
    return %c0_i32 : i32
  }
  func.func @transform_2(%arg0: i32) -> (i32, i32) {
    %c0_i32 = arith.constant 0 : i32
    %c0_i32_0 = arith.constant 0 : i32
    return %c0_i32, %arg0 : i32, i32
  }
  func.func @transform_3(%arg0: i32) -> (i32, i32) {
    %c0_i32 = arith.constant 0 : i32
    %c0_i32_0 = arith.constant 0 : i32
    return %c0_i32, %arg0 : i32, i32
  }
}

</mosaic_0001>

<bundles_post_ra>
// kernel: tpu_custom_call.1
= control target key start
LH: loop header
LB: loop body
LE: loop exit
PB: predicated region body
PF: predicated region fallthrough
CT: control target
= control target key end

     0   :  { %8 = vsyncpa [#allocation4], 0  ;;  %s197_s0 = inlined_call_operand.hbm [shape: f32[4], index: 0, kind: input, shape index: {}]   ;;  %s198_s1 = inlined_call_operand.vmem [shape: f32[2], index: 1, kind: input, shape index: {}]   ;;  %s199_s2 = inlined_call_operand.vmem [shape: f32[2,128], index: 2, kind: input, shape index: {}]   ;;  %s200_s3 = inlined_call_operand.hbm [shape: f32[2,128], index: 3, kind: output, shape index: {}]  }
   0x1   :  { %9 = vsyncpa [#allocation5], 0 }
   0x2   :  { %10 = vsyncpa [#allocation3], 0  ;;  %s25_s14 = sshll.u32 %s198_s1, 4  ;;  %s94_s17 = scalar_lea.hbm %s197_s0, 16  ;;  %s26_s14 = int_to_ptr.vmem [resolvable:$true] %s25_s14 }
   0x3   :  { %p95_p0 = scmp.ne.s32.totalorder %s197_s0, %s94_s17  ;;  %p98_p1 = scmp.lt.u32.totalorder %s94_s17, %s197_s0 }
   0x5   :  { %p100_p2 = pnand %p98_p1, %p95_p0 }
   0x7   :  { %103 = shalt.err (!%p100_p2)
}
   0x8   :  { %s144_s22 = smov [#allocation2]   ;;  %s104_s1 = scalar_lea.vmem %s26_s14, 16 }
   0x9   :  { %18 = dma.hbm_to_smem %s197_s0, 16, %s144_s22, [#allocation4]  }
   0xa   :  { %p105_p3 = scmp.ne.s32.totalorder %s26_s14, %s104_s1  ;;  %p109_p4 = scmp.lt.s32.totalorder %s26_s14, %s26_s14 }
   0xb   :  { %p110_p5 = scmp.lt.s32.totalorder %s104_s1, %s104_s1 }
   0xd   :  { %p111_p6 = por %p110_p5, %p109_p4 }
   0xf   :  { %p112_p7 = pnand %p111_p6, %p105_p3 }
  0x11   :  { %115 = shalt.err (!%p112_p7)
}
  0x12   :  { %s145_s25 = smov [#allocation6]  }
  0x13   :  { %28 = dma.vmem_to_smem %s26_s14, 16, %s145_s25, [#allocation5]  }
  0x14   :  { %138 = dma.done.wait [#allocation4], 16  }
  0x15   :  { %139 = vsyncadd [#allocation4], 4294967280 }
  0x16   :  { %140 = dma.done.wait [#allocation5], 16  }
  0x17   :  { %141 = vsyncadd [#allocation5], 4294967280 }
  0x18   :  { %37 = sfence }
  0x19   :  { %s39_s26 = sld [smem:[#allocation6]]  ;;  %s87_s28 = sld [smem:[#allocation2 + $0x1]]  ;;  %v38_v0 = vld [vmem:[%s199_s2] sm:$0x3]  ;;  %vm68_vm0 = vcmask 1040384  }
  0x1a   :  { %s41_s27 = sld [smem:[#allocation2]]  ;;  %s88_s29 = sld [smem:[#allocation6 + $0x1]] }
  0x1b   :  { %s89_s0 = sld [smem:[#allocation2 + $0x2]]  ;;  %s90_s30 = sld [smem:[#allocation2 + $0x3]] }
  0x1c   :  { %s146_s6 = smov [#allocation7]  }
  0x1d   :  { %s77_s7 = sshll.u32 %s146_s6, 4  ;;  %s78_s7 = int_to_ptr.vmem [resolvable:$true] %s77_s7 }
  0x1e   :  { %s116_s2 = scalar_lea.vmem %s78_s7, 32  ;;  %p121_p9 = scmp.lt.s32.totalorder %s78_s7, %s78_s7 }
  0x1f   :  { %v40_v1 = vstv %s39_s26  ;;  %v46_v4 = vstv %s87_s28  ;;  %p117_p8 = scmp.ne.s32.totalorder %s78_s7, %s116_s2  ;;  %p122_p10 = scmp.lt.s32.totalorder %s116_s2, %s116_s2 }
  0x20   :  { %v42_v2 = vstv %s41_s27  ;;  %v47_v5 = vmul.f32 %v46_v4, %v38_v0  ;;  %v53_v6 = vstv %s88_s29 }
  0x21   :  { %v43_v3 = vmul.f32 %v42_v2, %v38_v0  ;;  %v55_v7 = vstv %s89_s0  ;;  %v59_v8 = vstv %s90_s30  ;;  %p123_p11 = por %p122_p10, %p121_p9 }
  0x22   :  { %v56_v10 = vmul.f32 %v55_v7, %v38_v0  ;;  %v60_v11 = vmul.f32 %v59_v8, %v38_v0  ;;  %v49_v12 = vrot.slane %v47_v5, 1 }
  0x23   :  { %v44_v9 = vadd.f32 %v43_v3, %v40_v1  ;;  %p124_p12 = pnand %p123_p11, %p117_p8 }
  0x24   :  { %v57_v13 = vadd.f32 %v56_v10, %v53_v6  ;;  %v62_v14 = vrot.slane %v60_v11, 1 }
  0x25   :  { %v51_v15 = vadd.f32 %v49_v12, %v44_v9 }
  0x26   :  { %v64_v16 = vadd.f32 %v62_v14, %v57_v13 }
  0x28   :  { %v66_v17 = vrot.slane %v64_v16, 7 }
  0x2a   :  { %v69_v18 = vsel %vm68_vm0, %v51_v15, %v66_v17 }
  0x2b   :  { %70 = vst [vmem:[#allocation7] sm:$0x3] %v69_v18 }
  0x2c   :  { %127 = shalt.err (!%p124_p12)
}
  0x2d   :  { %s128_s10 = scalar_lea.hbm %s200_s3, 32 }
  0x2e   :  { %p129_p13 = scmp.ne.s32.totalorder %s200_s3, %s128_s10  ;;  %p132_p0 = scmp.lt.u32.totalorder %s128_s10, %s200_s3 }
  0x30   :  { %p134_p1 = pnand %p132_p0, %p129_p13 }
  0x32   :  { %137 = shalt.err (!%p134_p1)
}
  0x33   :  { %80 = dma.vmem_to_hbm [thread:$0]  %s78_s7, 32, %s200_s3, [#allocation3]  }
  0x34   :  { %142 = dma.done.wait [#allocation3], 32  }
  0x35   :  { %143 = vsyncadd [#allocation3], 4294967264 }
  0x36   :  { %84 = vsyncpa [#allocation3], 1 }
  0x37   :  { %85 = vsyncpa [#allocation4], 1 }
  0x38   :  { %86 = vsyncpa [#allocation5], 1 }

</bundles_post_ra>
